<compile_context>
chip_gen: v5e
topology: v5e:2x2
jax: 0.10.0
libtpu: 0.0.40
codegen_flags: <defaults>
</compile_context>

<pallas_src>
import functools

import jax
import jax.numpy as jnp
from jax.experimental import pallas as pl
from jax.experimental.pallas import tpu as pltpu


def _spectral_mix_kernel(a_ref, w_ref, o_ref):
    """Complex mode mixing with the (lo|hi) flattened-mode axis on lanes.

    Block shapes (TL = lane tile over the 2M flattened-mode axis):
      a_ref: (2, B,   Cin,  TL)    leading axis: 0 = real, 1 = imag
      w_ref: (2, Cin, Cout, TL)
      o_ref: (2, B,   Cout, TL)

    out[b, o, l] = sum_i a[b, i, l] * w[i, o, l]    (complex, per lane l)

    The Cin contraction is a short static unroll of VPU multiply-adds; B and
    Cout ride on sublanes.  Refs are indexed per iteration (no full-tile load
    followed by value slicing), and the only stores are two full-block,
    lane-dense stores at the end.
    """
    cin = a_ref.shape[2]

    acc_re = None
    acc_im = None
    for i in range(cin):                         # static unroll; Cin is small here
        a_re_i = a_ref[0, :, i, :][:, None, :]   # (B, 1, TL)
        a_im_i = a_ref[1, :, i, :][:, None, :]
        w_re_i = w_ref[0, i][None, :, :]         # (1, Cout, TL)
        w_im_i = w_ref[1, i][None, :, :]
        t_re = a_re_i * w_re_i - a_im_i * w_im_i
        t_im = a_im_i * w_re_i + a_re_i * w_im_i
        acc_re = t_re if acc_re is None else acc_re + t_re
        acc_im = t_im if acc_im is None else acc_im + t_im

    o_ref[0] = acc_re
    o_ref[1] = acc_im


def _vmem_capacity_bytes():
    """Physical VMEM of the local TPU; conservative default if unavailable."""
    try:
        return int(pltpu.get_tpu_info().vmem_capacity_bytes)
    except Exception:
        return 64 * 1024 * 1024   # assume the smallest (v7x per-TC VMEM)


def _pick_lane_tile(L, B, Cin, Cout, budget_bytes):
    """Lane-axis tile that never exceeds the VMEM budget.

    Prefers the full extent, then the largest 128-multiple divisor of L, then
    a 128-multiple cap with a ragged (masked) last block via pl.cdiv.
    """
    # f32, real+imag slabs, x2 for double buffering, per lane column:
    per_lane = 4 * 2 * 2 * (B * Cin + Cin * Cout + B * Cout)
    cap = max(128, (budget_bytes // per_lane) // 128 * 128)
    if L <= cap:
        return L                       # full-extent blocks fit (only legal option if L < 128)
    best = 0
    t = 128
    while t <= cap:                    # largest 128-multiple divisor of L within budget
        if L % t == 0:
            best = t
        t += 128
    return best if best else cap       # else ragged last block (pl.cdiv grid)


def _spectral_mix_pallas(a, w):
    """out[s,b,o,l] = sum_i a[s,b,i,l] (*) w[s,i,o,l]  (complex, per lane l).

    a: (2, B,   Cin,  L) float32   axis 0 = re/im; L = 2*modes_x*modes_t (lo|hi)
    w: (2, Cin, Cout, L) float32
    returns out: (2, B, Cout, L) float32
    """
    _, B, Cin, L = a.shape
    Cout = w.shape[2]

    vmem_cap = _vmem_capacity_bytes()
    budget = (vmem_cap * 3) // 8       # ~48 MiB on 128-MiB parts, ~24 MiB on v7x
    vmem_limit = (vmem_cap * 3) // 4   # ~96 MiB / ~48 MiB

    TL = _pick_lane_tile(L, B, Cin, Cout, budget)
    n_lt = pl.cdiv(L, TL)

    return pl.pallas_call(
        _spectral_mix_kernel,
        out_shape=jax.ShapeDtypeStruct((2, B, Cout, L), jnp.float32),
        grid_spec=pltpu.PrefetchScalarGridSpec(
            num_scalar_prefetch=0,
            grid=(n_lt,),
            in_specs=[
                pl.BlockSpec((2, B, Cin, TL), lambda t: (0, 0, 0, t)),
                pl.BlockSpec((2, Cin, Cout, TL), lambda t: (0, 0, 0, t)),
            ],
            out_specs=pl.BlockSpec((2, B, Cout, TL), lambda t: (0, 0, 0, t)),
        ),
        compiler_params=pltpu.CompilerParams(
            # TODO(synk): pltpu.CORE_PARALLEL here on v7x once n_lt >= 2.
            dimension_semantics=("parallel",),
            vmem_limit_bytes=vmem_limit,
        ),
    )(a, w)


class SpectralConv2dFast:
    """JAX port of SpectralConv2d_fast (deterministic init, no checkpoint)."""

    def __init__(self, in_channels, out_channels, modes_x, modes_t, key):
        assert in_channels == out_channels, (
            "original module writes (B,Cout,...) into a (B,Cin,...) buffer; "
            "semantics only well-defined when Cin == Cout")
        self.in_channels = in_channels
        self.out_channels = out_channels
        self.modes_x = modes_x
        self.modes_t = modes_t
        scale = 1.0 / (in_channels * out_channels)
        k1, k2 = jax.random.split(key)
        shape = (in_channels, out_channels, modes_x, modes_t, 2)
        # torch.rand -> U[0,1); match with jax.random.uniform.
        self.weights1 = scale * jax.random.uniform(k1, shape, dtype=jnp.float32)
        self.weights2 = scale * jax.random.uniform(k2, shape, dtype=jnp.float32)

        # Precompute the kernel-layout weights ONCE (they are constants):
        # re/im on a leading size-2 axis; lo(weights1)|hi(weights2) modes
        # flattened and concatenated on the lane axis.
        M = modes_x * modes_t
        Cin, Cout = in_channels, out_channels
        w1 = self.weights1.reshape(Cin, Cout, M, 2)
        w2 = self.weights2.reshape(Cin, Cout, M, 2)
        w_re = jnp.concatenate([w1[..., 0], w2[..., 0]], axis=-1)   # (Cin, Cout, 2M)
        w_im = jnp.concatenate([w1[..., 1], w2[..., 1]], axis=-1)
        self.w_packed = jnp.stack([w_re, w_im], axis=0)             # (2, Cin, Cout, 2M)

    def __call__(self, x):
        # x: (B, Cin, H, W) float32  (NCHW, same as the PyTorch module)
        B, C, H, W = x.shape
        mx, mt = self.modes_x, self.modes_t
        M = mx * mt
        Wh = W // 2 + 1
        Cin, Cout = self.in_channels, self.out_channels

        # torch.rfft(x, 2, normalized=True, onesided=True)
        x_ft = jnp.fft.rfft2(x, norm="ortho")           # (B, Cin, H, Wh) complex64

        # Kept-mode slab in kernel layout: re/im on a leading axis, lo|hi modes
        # flattened on the last (lane) axis.  Single fused producer for `a`.
        lo = x_ft[:, :, :mx, :mt].reshape(B, Cin, M)
        hi = x_ft[:, :, H - mx:, :mt].reshape(B, Cin, M)
        a_c = jnp.concatenate([lo, hi], axis=-1)         # (B, Cin, 2M) complex64
        a = jnp.stack([jnp.real(a_c), jnp.imag(a_c)], axis=0).astype(jnp.float32)

        out = _spectral_mix_pallas(a, self.w_packed)     # (2, B, Cout, 2M) f32
        out_c = (out[0] + 1j * out[1]).astype(jnp.complex64)   # (B, Cout, 2M)

        # Scatter the mixed modes back.  Note: if 2*mx > H the hi slab
        # overwrites part of the lo slab — this matches the PyTorch module's
        # in-place assignment order.
        out_ft = jnp.zeros((B, Cin, H, Wh), dtype=jnp.complex64)
        out_ft = out_ft.at[:, :, :mx, :mt].set(
            out_c[:, :, :M].reshape(B, Cout, mx, mt))
        out_ft = out_ft.at[:, :, H - mx:, :mt].set(
            out_c[:, :, M:].reshape(B, Cout, mx, mt))

        # torch.irfft(out_ft, 2, normalized=True, onesided=True, signal_sizes=(H, W))
        return jnp.fft.irfft2(out_ft, s=(H, W), norm="ortho")


def _reference_compl_mul(a, w):
    # Pure-JAX reference of compl_mul2d for a correctness check.
    op = functools.partial(jnp.einsum, "bixt,ioxt->boxt")
    re = op(jnp.real(a), w[..., 0]) - op(jnp.imag(a), w[..., 1])
    im = op(jnp.imag(a), w[..., 0]) + op(jnp.real(a), w[..., 1])
    return re + 1j * im


def _reference_forward(layer, x):
    B, C, H, W = x.shape
    mx, mt = layer.modes_x, layer.modes_t
    x_ft = jnp.fft.rfft2(x, norm="ortho")
    out_ft = jnp.zeros((B, layer.in_channels, H, W // 2 + 1), dtype=jnp.complex64)
    out_ft = out_ft.at[:, :, :mx, :mt].set(
        _reference_compl_mul(x_ft[:, :, :mx, :mt], layer.weights1))
    out_ft = out_ft.at[:, :, H - mx:, :mt].set(
        _reference_compl_mul(x_ft[:, :, -mx:, :mt], layer.weights2))
    return jnp.fft.irfft2(out_ft, s=(H, W), norm="ortho")


if __name__ == "__main__":
    key = jax.random.PRNGKey(0)
    k_x, k_w = jax.random.split(key)

    B, C_in, C_out, H, W = 2, 4, 4, 16, 16
    modes_x, modes_t = 4, 4

    x = jax.random.normal(k_x, (B, C_in, H, W), dtype=jnp.float32)
    layer = SpectralConv2dFast(C_in, C_out, modes_x, modes_t, k_w)

    out = layer(x)
    out = jax.block_until_ready(out)

    ref = jax.block_until_ready(_reference_forward(layer, x))
    assert out.shape == (B, C_out, H, W)
    assert jnp.allclose(out, ref, atol=1e-5, rtol=1e-5)

    print("KERNEL_OK")
</pallas_src>

<mosaic_0001>
module attributes {stable_mosaic.version = 11 : i64} {
  func.func @_spectral_mix_kernel(%arg0: i32, %arg1: memref<2x2x4x32xf32, #tpu.memory_space<vmem>>, %arg2: memref<2x4x4x32xf32, #tpu.memory_space<vmem>>, %arg3: memref<2x2x4x32xf32, #tpu.memory_space<vmem>>) attributes {dimension_semantics = [#tpu.dimension_semantics<parallel>], iteration_bounds = array<i64: 1>, scalar_prefetch = 0 : i64, scratch_operands = 0 : i64, tpu.core_type = #tpu.core_type<tc>, window_params = [{transform_indices = @transform_0, window_bounds = array<i64: 2, 2, 4, 32>}, {transform_indices = @transform_1, window_bounds = array<i64: 2, 4, 4, 32>}, {transform_indices = @transform_2, window_bounds = array<i64: 2, 2, 4, 32>}]} {
    %c0 = arith.constant 0 : index
    %c0_0 = arith.constant 0 : index
    %c0_1 = arith.constant 0 : index
    %c0_2 = arith.constant 0 : index
    %0 = vector.load %arg1[%c0, %c0_0, %c0_1, %c0_2] : memref<2x2x4x32xf32, #tpu.memory_space<vmem>>, vector<1x2x1x32xf32>
    %1 = vector.shape_cast %0 : vector<1x2x1x32xf32> to vector<2x32xf32>
    %2 = vector.shape_cast %1 : vector<2x32xf32> to vector<2x1x32xf32>
    %c1 = arith.constant 1 : index
    %c0_3 = arith.constant 0 : index
    %c0_4 = arith.constant 0 : index
    %c0_5 = arith.constant 0 : index
    %3 = vector.load %arg1[%c1, %c0_3, %c0_4, %c0_5] : memref<2x2x4x32xf32, #tpu.memory_space<vmem>>, vector<1x2x1x32xf32>
    %4 = vector.shape_cast %3 : vector<1x2x1x32xf32> to vector<2x32xf32>
    %5 = vector.shape_cast %4 : vector<2x32xf32> to vector<2x1x32xf32>
    %c0_6 = arith.constant 0 : index
    %c0_7 = arith.constant 0 : index
    %c0_8 = arith.constant 0 : index
    %c0_9 = arith.constant 0 : index
    %6 = vector.load %arg2[%c0_6, %c0_7, %c0_8, %c0_9] : memref<2x4x4x32xf32, #tpu.memory_space<vmem>>, vector<1x1x4x32xf32>
    %7 = vector.shape_cast %6 : vector<1x1x4x32xf32> to vector<4x32xf32>
    %8 = vector.shape_cast %7 : vector<4x32xf32> to vector<1x4x32xf32>
    %c1_10 = arith.constant 1 : index
    %c0_11 = arith.constant 0 : index
    %c0_12 = arith.constant 0 : index
    %c0_13 = arith.constant 0 : index
    %9 = vector.load %arg2[%c1_10, %c0_11, %c0_12, %c0_13] : memref<2x4x4x32xf32, #tpu.memory_space<vmem>>, vector<1x1x4x32xf32>
    %10 = vector.shape_cast %9 : vector<1x1x4x32xf32> to vector<4x32xf32>
    %11 = vector.shape_cast %10 : vector<4x32xf32> to vector<1x4x32xf32>
    %12 = vector.broadcast %2 : vector<2x1x32xf32> to vector<2x4x32xf32>
    %13 = vector.broadcast %8 : vector<1x4x32xf32> to vector<2x4x32xf32>
    %14 = arith.mulf %12, %13 : vector<2x4x32xf32>
    %15 = vector.broadcast %5 : vector<2x1x32xf32> to vector<2x4x32xf32>
    %16 = vector.broadcast %11 : vector<1x4x32xf32> to vector<2x4x32xf32>
    %17 = arith.mulf %15, %16 : vector<2x4x32xf32>
    %18 = arith.subf %14, %17 : vector<2x4x32xf32>
    %19 = vector.broadcast %5 : vector<2x1x32xf32> to vector<2x4x32xf32>
    %20 = vector.broadcast %8 : vector<1x4x32xf32> to vector<2x4x32xf32>
    %21 = arith.mulf %19, %20 : vector<2x4x32xf32>
    %22 = vector.broadcast %2 : vector<2x1x32xf32> to vector<2x4x32xf32>
    %23 = vector.broadcast %11 : vector<1x4x32xf32> to vector<2x4x32xf32>
    %24 = arith.mulf %22, %23 : vector<2x4x32xf32>
    %25 = arith.addf %21, %24 : vector<2x4x32xf32>
    %c0_14 = arith.constant 0 : index
    %c0_15 = arith.constant 0 : index
    %c1_16 = arith.constant 1 : index
    %c0_17 = arith.constant 0 : index
    %26 = vector.load %arg1[%c0_14, %c0_15, %c1_16, %c0_17] : memref<2x2x4x32xf32, #tpu.memory_space<vmem>>, vector<1x2x1x32xf32>
    %27 = vector.shape_cast %26 : vector<1x2x1x32xf32> to vector<2x32xf32>
    %28 = vector.shape_cast %27 : vector<2x32xf32> to vector<2x1x32xf32>
    %c1_18 = arith.constant 1 : index
    %c0_19 = arith.constant 0 : index
    %c1_20 = arith.constant 1 : index
    %c0_21 = arith.constant 0 : index
    %29 = vector.load %arg1[%c1_18, %c0_19, %c1_20, %c0_21] : memref<2x2x4x32xf32, #tpu.memory_space<vmem>>, vector<1x2x1x32xf32>
    %30 = vector.shape_cast %29 : vector<1x2x1x32xf32> to vector<2x32xf32>
    %31 = vector.shape_cast %30 : vector<2x32xf32> to vector<2x1x32xf32>
    %c0_22 = arith.constant 0 : index
    %c1_23 = arith.constant 1 : index
    %c0_24 = arith.constant 0 : index
    %c0_25 = arith.constant 0 : index
    %32 = vector.load %arg2[%c0_22, %c1_23, %c0_24, %c0_25] : memref<2x4x4x32xf32, #tpu.memory_space<vmem>>, vector<1x1x4x32xf32>
    %33 = vector.shape_cast %32 : vector<1x1x4x32xf32> to vector<4x32xf32>
    %34 = vector.shape_cast %33 : vector<4x32xf32> to vector<1x4x32xf32>
    %c1_26 = arith.constant 1 : index
    %c1_27 = arith.constant 1 : index
    %c0_28 = arith.constant 0 : index
    %c0_29 = arith.constant 0 : index
    %35 = vector.load %arg2[%c1_26, %c1_27, %c0_28, %c0_29] : memref<2x4x4x32xf32, #tpu.memory_space<vmem>>, vector<1x1x4x32xf32>
    %36 = vector.shape_cast %35 : vector<1x1x4x32xf32> to vector<4x32xf32>
    %37 = vector.shape_cast %36 : vector<4x32xf32> to vector<1x4x32xf32>
    %38 = vector.broadcast %28 : vector<2x1x32xf32> to vector<2x4x32xf32>
    %39 = vector.broadcast %34 : vector<1x4x32xf32> to vector<2x4x32xf32>
    %40 = arith.mulf %38, %39 : vector<2x4x32xf32>
    %41 = vector.broadcast %31 : vector<2x1x32xf32> to vector<2x4x32xf32>
    %42 = vector.broadcast %37 : vector<1x4x32xf32> to vector<2x4x32xf32>
    %43 = arith.mulf %41, %42 : vector<2x4x32xf32>
    %44 = arith.subf %40, %43 : vector<2x4x32xf32>
    %45 = vector.broadcast %31 : vector<2x1x32xf32> to vector<2x4x32xf32>
    %46 = vector.broadcast %34 : vector<1x4x32xf32> to vector<2x4x32xf32>
    %47 = arith.mulf %45, %46 : vector<2x4x32xf32>
    %48 = vector.broadcast %28 : vector<2x1x32xf32> to vector<2x4x32xf32>
    %49 = vector.broadcast %37 : vector<1x4x32xf32> to vector<2x4x32xf32>
    %50 = arith.mulf %48, %49 : vector<2x4x32xf32>
    %51 = arith.addf %47, %50 : vector<2x4x32xf32>
    %52 = arith.addf %18, %44 : vector<2x4x32xf32>
    %53 = arith.addf %25, %51 : vector<2x4x32xf32>
    %c0_30 = arith.constant 0 : index
    %c0_31 = arith.constant 0 : index
    %c2 = arith.constant 2 : index
    %c0_32 = arith.constant 0 : index
    %54 = vector.load %arg1[%c0_30, %c0_31, %c2, %c0_32] : memref<2x2x4x32xf32, #tpu.memory_space<vmem>>, vector<1x2x1x32xf32>
    %55 = vector.shape_cast %54 : vector<1x2x1x32xf32> to vector<2x32xf32>
    %56 = vector.shape_cast %55 : vector<2x32xf32> to vector<2x1x32xf32>
    %c1_33 = arith.constant 1 : index
    %c0_34 = arith.constant 0 : index
    %c2_35 = arith.constant 2 : index
    %c0_36 = arith.constant 0 : index
    %57 = vector.load %arg1[%c1_33, %c0_34, %c2_35, %c0_36] : memref<2x2x4x32xf32, #tpu.memory_space<vmem>>, vector<1x2x1x32xf32>
    %58 = vector.shape_cast %57 : vector<1x2x1x32xf32> to vector<2x32xf32>
    %59 = vector.shape_cast %58 : vector<2x32xf32> to vector<2x1x32xf32>
    %c0_37 = arith.constant 0 : index
    %c2_38 = arith.constant 2 : index
    %c0_39 = arith.constant 0 : index
    %c0_40 = arith.constant 0 : index
    %60 = vector.load %arg2[%c0_37, %c2_38, %c0_39, %c0_40] : memref<2x4x4x32xf32, #tpu.memory_space<vmem>>, vector<1x1x4x32xf32>
    %61 = vector.shape_cast %60 : vector<1x1x4x32xf32> to vector<4x32xf32>
    %62 = vector.shape_cast %61 : vector<4x32xf32> to vector<1x4x32xf32>
    %c1_41 = arith.constant 1 : index
    %c2_42 = arith.constant 2 : index
    %c0_43 = arith.constant 0 : index
    %c0_44 = arith.constant 0 : index
    %63 = vector.load %arg2[%c1_41, %c2_42, %c0_43, %c0_44] : memref<2x4x4x32xf32, #tpu.memory_space<vmem>>, vector<1x1x4x32xf32>
    %64 = vector.shape_cast %63 : vector<1x1x4x32xf32> to vector<4x32xf32>
    %65 = vector.shape_cast %64 : vector<4x32xf32> to vector<1x4x32xf32>
    %66 = vector.broadcast %56 : vector<2x1x32xf32> to vector<2x4x32xf32>
    %67 = vector.broadcast %62 : vector<1x4x32xf32> to vector<2x4x32xf32>
    %68 = arith.mulf %66, %67 : vector<2x4x32xf32>
    %69 = vector.broadcast %59 : vector<2x1x32xf32> to vector<2x4x32xf32>
    %70 = vector.broadcast %65 : vector<1x4x32xf32> to vector<2x4x32xf32>
    %71 = arith.mulf %69, %70 : vector<2x4x32xf32>
    %72 = arith.subf %68, %71 : vector<2x4x32xf32>
    %73 = vector.broadcast %59 : vector<2x1x32xf32> to vector<2x4x32xf32>
    %74 = vector.broadcast %62 : vector<1x4x32xf32> to vector<2x4x32xf32>
    %75 = arith.mulf %73, %74 : vector<2x4x32xf32>
    %76 = vector.broadcast %56 : vector<2x1x32xf32> to vector<2x4x32xf32>
    %77 = vector.broadcast %65 : vector<1x4x32xf32> to vector<2x4x32xf32>
    %78 = arith.mulf %76, %77 : vector<2x4x32xf32>
    %79 = arith.addf %75, %78 : vector<2x4x32xf32>
    %80 = arith.addf %52, %72 : vector<2x4x32xf32>
    %81 = arith.addf %53, %79 : vector<2x4x32xf32>
    %c0_45 = arith.constant 0 : index
    %c0_46 = arith.constant 0 : index
    %c3 = arith.constant 3 : index
    %c0_47 = arith.constant 0 : index
    %82 = vector.load %arg1[%c0_45, %c0_46, %c3, %c0_47] : memref<2x2x4x32xf32, #tpu.memory_space<vmem>>, vector<1x2x1x32xf32>
    %83 = vector.shape_cast %82 : vector<1x2x1x32xf32> to vector<2x32xf32>
    %84 = vector.shape_cast %83 : vector<2x32xf32> to vector<2x1x32xf32>
    %c1_48 = arith.constant 1 : index
    %c0_49 = arith.constant 0 : index
    %c3_50 = arith.constant 3 : index
    %c0_51 = arith.constant 0 : index
    %85 = vector.load %arg1[%c1_48, %c0_49, %c3_50, %c0_51] : memref<2x2x4x32xf32, #tpu.memory_space<vmem>>, vector<1x2x1x32xf32>
    %86 = vector.shape_cast %85 : vector<1x2x1x32xf32> to vector<2x32xf32>
    %87 = vector.shape_cast %86 : vector<2x32xf32> to vector<2x1x32xf32>
    %c0_52 = arith.constant 0 : index
    %c3_53 = arith.constant 3 : index
    %c0_54 = arith.constant 0 : index
    %c0_55 = arith.constant 0 : index
    %88 = vector.load %arg2[%c0_52, %c3_53, %c0_54, %c0_55] : memref<2x4x4x32xf32, #tpu.memory_space<vmem>>, vector<1x1x4x32xf32>
    %89 = vector.shape_cast %88 : vector<1x1x4x32xf32> to vector<4x32xf32>
    %90 = vector.shape_cast %89 : vector<4x32xf32> to vector<1x4x32xf32>
    %c1_56 = arith.constant 1 : index
    %c3_57 = arith.constant 3 : index
    %c0_58 = arith.constant 0 : index
    %c0_59 = arith.constant 0 : index
    %91 = vector.load %arg2[%c1_56, %c3_57, %c0_58, %c0_59] : memref<2x4x4x32xf32, #tpu.memory_space<vmem>>, vector<1x1x4x32xf32>
    %92 = vector.shape_cast %91 : vector<1x1x4x32xf32> to vector<4x32xf32>
    %93 = vector.shape_cast %92 : vector<4x32xf32> to vector<1x4x32xf32>
    %94 = vector.broadcast %84 : vector<2x1x32xf32> to vector<2x4x32xf32>
    %95 = vector.broadcast %90 : vector<1x4x32xf32> to vector<2x4x32xf32>
    %96 = arith.mulf %94, %95 : vector<2x4x32xf32>
    %97 = vector.broadcast %87 : vector<2x1x32xf32> to vector<2x4x32xf32>
    %98 = vector.broadcast %93 : vector<1x4x32xf32> to vector<2x4x32xf32>
    %99 = arith.mulf %97, %98 : vector<2x4x32xf32>
    %100 = arith.subf %96, %99 : vector<2x4x32xf32>
    %101 = vector.broadcast %87 : vector<2x1x32xf32> to vector<2x4x32xf32>
    %102 = vector.broadcast %90 : vector<1x4x32xf32> to vector<2x4x32xf32>
    %103 = arith.mulf %101, %102 : vector<2x4x32xf32>
    %104 = vector.broadcast %84 : vector<2x1x32xf32> to vector<2x4x32xf32>
    %105 = vector.broadcast %93 : vector<1x4x32xf32> to vector<2x4x32xf32>
    %106 = arith.mulf %104, %105 : vector<2x4x32xf32>
    %107 = arith.addf %103, %106 : vector<2x4x32xf32>
    %108 = arith.addf %80, %100 : vector<2x4x32xf32>
    %109 = arith.addf %81, %107 : vector<2x4x32xf32>
    %c0_60 = arith.constant 0 : index
    %c0_61 = arith.constant 0 : index
    %c0_62 = arith.constant 0 : index
    %c0_63 = arith.constant 0 : index
    %110 = vector.load %arg3[%c0_60, %c0_61, %c0_62, %c0_63] : memref<2x2x4x32xf32, #tpu.memory_space<vmem>>, vector<1x2x4x32xf32>
    %111 = vector.shape_cast %110 : vector<1x2x4x32xf32> to vector<2x4x32xf32>
    %112 = vector.shape_cast %108 : vector<2x4x32xf32> to vector<1x2x4x32xf32>
    tpu.vector_store %arg3[%c0_60, %c0_61, %c0_62, %c0_63], %112 {strides = array<i32>} : memref<2x2x4x32xf32, #tpu.memory_space<vmem>>, vector<1x2x4x32xf32>,
    %c1_64 = arith.constant 1 : index
    %c0_65 = arith.constant 0 : index
    %c0_66 = arith.constant 0 : index
    %c0_67 = arith.constant 0 : index
    %113 = vector.load %arg3[%c1_64, %c0_65, %c0_66, %c0_67] : memref<2x2x4x32xf32, #tpu.memory_space<vmem>>, vector<1x2x4x32xf32>
    %114 = vector.shape_cast %113 : vector<1x2x4x32xf32> to vector<2x4x32xf32>
    %115 = vector.shape_cast %109 : vector<2x4x32xf32> to vector<1x2x4x32xf32>
    tpu.vector_store %arg3[%c1_64, %c0_65, %c0_66, %c0_67], %115 {strides = array<i32>} : memref<2x2x4x32xf32, #tpu.memory_space<vmem>>, vector<1x2x4x32xf32>,
    return
  }
  func.func @transform_0(%arg0: i32) -> (i32, i32, i32, i32) {
    %c0_i32 = arith.constant 0 : i32
    %c0_i32_0 = arith.constant 0 : i32
    %c0_i32_1 = arith.constant 0 : i32
    %c0_i32_2 = arith.constant 0 : i32
    return %c0_i32, %c0_i32_0, %c0_i32_1, %arg0 : i32, i32, i32, i32
  }
  func.func @transform_1(%arg0: i32) -> (i32, i32, i32, i32) {
    %c0_i32 = arith.constant 0 : i32
    %c0_i32_0 = arith.constant 0 : i32
    %c0_i32_1 = arith.constant 0 : i32
    %c0_i32_2 = arith.constant 0 : i32
    return %c0_i32, %c0_i32_0, %c0_i32_1, %arg0 : i32, i32, i32, i32
  }
  func.func @transform_2(%arg0: i32) -> (i32, i32, i32, i32) {
    %c0_i32 = arith.constant 0 : i32
    %c0_i32_0 = arith.constant 0 : i32
    %c0_i32_1 = arith.constant 0 : i32
    %c0_i32_2 = arith.constant 0 : i32
    return %c0_i32, %c0_i32_0, %c0_i32_1, %arg0 : i32, i32, i32, i32
  }
}

</mosaic_0001>

<bundles_post_ra>
// kernel: tpu_custom_call.1
= control target key start
LH: loop header
LB: loop body
LE: loop exit
PB: predicated region body
PF: predicated region fallthrough
CT: control target
= control target key end

     0   :  { %7 = vsyncpa [#allocation3], 0  ;;  %s331_s0 = inlined_call_operand.hbm [shape: f32[2,2,4,32], index: 0, kind: input, shape index: {}]   ;;  %s332_s1 = inlined_call_operand.hbm [shape: f32[2,4,4,32], index: 1, kind: input, shape index: {}]   ;;  %s333_s2 = inlined_call_operand.hbm [shape: f32[2,2,4,32], index: 2, kind: output, shape index: {}]  }
   0x1   :  { %8 = vsyncpa [#allocation6], 0 }
   0x2   :  { %9 = vsyncpa [#allocation4], 0  ;;  %s14_s11 = sshll.u32 %s331_s0, 4  ;;  %s277_s12 = smov [#allocation2]   ;;  %s15_s11 = int_to_ptr.hbm [resolvable:$true] %s14_s11 }
   0x3   :  { %s16_s13 = sshll.u32 %s277_s12, 4  ;;  %s27_s16 = sshll.u32 %s332_s1, 4  ;;  %s17_s13 = int_to_ptr.vmem [resolvable:$true] %s16_s13  ;;  %s28_s16 = int_to_ptr.hbm [resolvable:$true] %s27_s16 }
   0x4   :  { %s278_s17 = smov 64   ;;  %s279_s18 = smov 4  }
   0x5   :  { %22 = dma.hbm_to_vmem [thread:$0]  %s15_s11, 256, %s17_s13, [#allocation3], %s278_s17, %s278_s17, %s279_s18  }
   0x6   :  { %s280_s19 = smov [#allocation5]  }
   0x7   :  { %s29_s20 = sshll.u32 %s280_s19, 4  ;;  %s30_s20 = int_to_ptr.vmem [resolvable:$true] %s29_s20 }
   0x8   :  { %35 = dma.hbm_to_vmem [thread:$0]  %s28_s16, 512, %s30_s20, [#allocation6], %s278_s17, %s278_s17, %s279_s18  }
   0x9   :  { %271 = dma.done.wait [#allocation3], 256  }
   0xa   :  { %272 = vsyncadd [#allocation3], 4294967040 }
   0xb   :  { %273 = dma.done.wait [#allocation6], 512  }
   0xc   :  { %274 = vsyncadd [#allocation6], 4294966784  ;;  %v49_v0 = vld [vmem:[#allocation5] sm:$0xf]  ;;  %v309_v1 = vld [vmem:[#allocation5 + $0x10] sm:$0xf] }
   0xd   :  { %v183_v2 = vld [vmem:[#allocation2] ss:$0 sm:$0xff]  ;;  %v184_v3 = vld [vmem:[#allocation2 + $0x8] ss:$0 sm:$0xff]  ;;  %v311_v4 = vld [vmem:[#allocation5 + $0x4] sm:$0xf] }
   0xe   :  { %v54_v5 = vmul.f32 %v183_v2, %v49_v0  ;;  %v58_v6 = vmul.f32 %v184_v3, %v309_v1  ;;  %v75_v7 = vld [vmem:[#allocation5 + $0x14] sm:$0xf]  ;;  %v185_v8 = vld [vmem:[#allocation2 + $0x1] ss:$0 sm:$0xff]  ;;  %v186_v9 = vld [vmem:[#allocation2 + $0x9] ss:$0 sm:$0xff]  ;;  %v62_v10 = vmul.f32 %v184_v3, %v49_v0  ;;  %v64_v11 = vmul.f32 %v183_v2, %v309_v1 }
   0xf   :  { %v101_v12 = vld [vmem:[#allocation5 + $0x8] sm:$0xf]  ;;  %vm152_vm0 = vcmask 257024   ;;  %v78_v14 = vmul.f32 %v185_v8, %v311_v4  ;;  %v82_v15 = vmul.f32 %v186_v9, %v75_v7  ;;  %v103_v16 = vld [vmem:[#allocation5 + $0x18] sm:$0xf]  ;;  %v86_v21 = vmul.f32 %v186_v9, %v311_v4  ;;  %s281_s0 = smov [#allocation7]  }
  0x10   :  { %v60_v13 = vsub.f32 %v54_v5, %v58_v6  ;;  %v187_v17 = vld [vmem:[#allocation2 + $0x2] ss:$0 sm:$0xff]  ;;  %v188_v18 = vld [vmem:[#allocation2 + $0xa] ss:$0 sm:$0xff]  ;;  %v129_v19 = vld [vmem:[#allocation5 + $0xc] sm:$0xf]  ;;  %v66_v20 = vadd.f32 %v64_v11, %v62_v10  ;;  %v88_v22 = vmul.f32 %v185_v8, %v75_v7 }
  0x11   :  { %v84_v23 = vsub.f32 %v78_v14, %v82_v15  ;;  %v106_v24 = vmul.f32 %v187_v17, %v101_v12  ;;  %v110_v25 = vmul.f32 %v188_v18, %v103_v16  ;;  %v131_v26 = vld [vmem:[#allocation5 + $0x1c] sm:$0xf]  ;;  %v189_v27 = vld [vmem:[#allocation2 + $0x3] ss:$0 sm:$0xff]  ;;  %v190_v28 = vld [vmem:[#allocation2 + $0xb] ss:$0 sm:$0xff]  ;;  %v114_v29 = vmul.f32 %v188_v18, %v101_v12 }
  0x12   :  { %v191_v30 = vld [vmem:[#allocation2 + $0x4] ss:$0 sm:$0xff]  ;;  %v90_v31 = vadd.f32 %v88_v22, %v86_v21  ;;  %v116_v32 = vmul.f32 %v187_v17, %v103_v16  ;;  %v134_v35 = vmul.f32 %v189_v27, %v129_v19  ;;  %v138_v36 = vmul.f32 %v190_v28, %v131_v26  ;;  %v192_v37 = vld [vmem:[#allocation2 + $0xc] ss:$0 sm:$0xff]  ;;  %v193_v39 = vld [vmem:[#allocation2 + $0x5] ss:$0 sm:$0xff] }
  0x13   :  { %v92_v33 = vadd.f32 %v84_v23, %v60_v13  ;;  %v112_v34 = vsub.f32 %v106_v24, %v110_v25  ;;  %v55_v38 = vmul.f32 %v191_v30, %v49_v0  ;;  %v194_v40 = vld [vmem:[#allocation2 + $0xd] ss:$0 sm:$0xff]  ;;  %v142_v43 = vmul.f32 %v190_v28, %v129_v19  ;;  %v195_v47 = vld [vmem:[#allocation2 + $0x6] ss:$0 sm:$0xff]  ;;  %v196_v48 = vld [vmem:[#allocation2 + $0xe] ss:$0 sm:$0xff] }
  0x14   :  { %v94_v41 = vadd.f32 %v90_v31, %v66_v20  ;;  %v118_v42 = vadd.f32 %v116_v32, %v114_v29  ;;  %v140_v45 = vsub.f32 %v134_v35, %v138_v36  ;;  %v59_v46 = vmul.f32 %v192_v37, %v309_v1  ;;  %v197_v52 = vld [vmem:[#allocation2 + $0x7] ss:$0 sm:$0xff]  ;;  %v198_v59 = vld [vmem:[#allocation2 + $0xf] ss:$0 sm:$0xff]  ;;  %s162_s1 = sshll.u32 %s281_s0, 4  ;;  %s164_s23 = sshll.u32 %s333_s2, 4  ;;  %s163_s1 = int_to_ptr.vmem [resolvable:$true] %s162_s1  ;;  %s165_s23 = int_to_ptr.hbm [resolvable:$true] %s164_s23 }
  0x15   :  { %v120_v44 = vadd.f32 %v112_v34, %v92_v33  ;;  %v144_v49 = vmul.f32 %v189_v27, %v131_v26  ;;  %v79_v50 = vmul.f32 %v193_v39, %v311_v4  ;;  %v83_v51 = vmul.f32 %v194_v40, %v75_v7 }
  0x16   :  { %v122_v53 = vadd.f32 %v118_v42, %v94_v41  ;;  %v63_v54 = vmul.f32 %v192_v37, %v49_v0  ;;  %v61_v56 = vsub.f32 %v55_v38, %v59_v46  ;;  %v107_v57 = vmul.f32 %v195_v47, %v101_v12 }
  0x17   :  { %v148_v55 = vadd.f32 %v140_v45, %v120_v44  ;;  %v111_v58 = vmul.f32 %v196_v48, %v103_v16  ;;  %v85_v60 = vsub.f32 %v79_v50, %v83_v51  ;;  %v135_v61 = vmul.f32 %v197_v52, %v129_v19 }
  0x18   :  { %v146_v62 = vadd.f32 %v144_v49, %v142_v43  ;;  %v65_v63 = vmul.f32 %v191_v30, %v309_v1  ;;  %v139_v3 = vmul.f32 %v198_v59, %v131_v26  ;;  %v87_v5 = vmul.f32 %v194_v40, %v311_v4 }
  0x19   :  { %153 = vst.msk [vmem:[#allocation7] sm:$0xf] %vm152_vm0, %v148_v55  ;;  %v113_v2 = vsub.f32 %v107_v57, %v111_v58  ;;  %v89_v6 = vmul.f32 %v193_v39, %v75_v7  ;;  %v93_v8 = vadd.f32 %v85_v60, %v61_v56  ;;  %v115_v10 = vmul.f32 %v196_v48, %v101_v12 }
  0x1a   :  { %v150_v9 = vadd.f32 %v146_v62, %v122_v53  ;;  %v67_v0 = vadd.f32 %v65_v63, %v63_v54  ;;  %v141_v11 = vsub.f32 %v135_v61, %v139_v3  ;;  %v117_v14 = vmul.f32 %v195_v47, %v103_v16 }
  0x1b   :  { %v91_v13 = vadd.f32 %v89_v6, %v87_v5  ;;  %v143_v15 = vmul.f32 %v198_v59, %v129_v19  ;;  %v121_v17 = vadd.f32 %v113_v2, %v93_v8  ;;  %v145_v18 = vmul.f32 %v197_v52, %v131_v26 }
  0x1c   :  { %156 = vst.msk [vmem:[#allocation7 + $0x8] sm:$0xf] %vm152_vm0, %v150_v9  ;;  %v119_v20 = vadd.f32 %v117_v14, %v115_v10 }
  0x1d   :  { %v95_v1 = vadd.f32 %v91_v13, %v67_v0  ;;  %v149_v21 = vadd.f32 %v141_v11, %v121_v17  ;;  %v147_v22 = vadd.f32 %v145_v18, %v143_v15 }
  0x1f   :  { %v123_v4 = vadd.f32 %v119_v20, %v95_v1  ;;  %154 = vst.msk [vmem:[#allocation7 + $0x4] sm:$0xf] %vm152_vm0, %v149_v21 }
  0x21   :  { %v151_v7 = vadd.f32 %v147_v22, %v123_v4 }
  0x23   :  { %157 = vst.msk [vmem:[#allocation7 + $0xc] sm:$0xf] %vm152_vm0, %v151_v7 }
  0x24   :  { %170 = dma.vmem_to_hbm [thread:$0]  %s163_s1, 256, %s165_s23, [#allocation4], %s278_s17, %s278_s17, %s279_s18  }
  0x25   :  { %275 = dma.done.wait [#allocation4], 256  }
  0x26   :  { %276 = vsyncadd [#allocation4], 4294967040 }
  0x27   :  { %175 = vsyncpa [#allocation3], 1 }
  0x28   :  { %176 = vsyncpa [#allocation6], 1 }
  0x29   :  { %177 = vsyncpa [#allocation4], 1 }

</bundles_post_ra>
